<compile_context>
chip_gen: v5e
topology: v5e:2x2
jax: 0.10.0
libtpu: 0.0.40
codegen_flags: <defaults>
</compile_context>

<pallas_src>
import jax
import jax.numpy as jnp
from jax.experimental import pallas as pl
from jax.experimental.pallas import tpu as pltpu

HIDDEN1 = 400
HIDDEN2 = 300
H1_PAD = 512   # lane-multiple padding of hidden dim 1
H2_PAD = 384   # lane-multiple padding of hidden dim 2


def _critic_kernel(xu_ref, w1_ref, b1_ref, w2_ref, b2_ref, w3_ref, b3_ref, o_ref):
    # Layer 1: single MXU matmul over the fused [x, u] features, f32 accumulate.
    h1 = jnp.dot(xu_ref[...], w1_ref[...], preferred_element_type=jnp.float32)
    h1 = jnp.maximum(h1 + b1_ref[...], 0.0)                       # (TM, 512) f32

    # Layer 2: MXU matmul (operands in compute dtype) + bias + ReLU in f32.
    h2 = jnp.dot(h1.astype(w2_ref.dtype), w2_ref[...],
                 preferred_element_type=jnp.float32)
    h2 = jnp.maximum(h2 + b2_ref[...], 0.0)                       # (TM, 384) f32

    # Layer 3 (N=1): VPU multiply + XLU lane reduce; b3 is an SMEM scalar.
    # Padded lanes of h2 / w3 are zero, so they contribute nothing.
    q = jnp.sum(h2 * w3_ref[...], axis=-1, keepdims=True) + b3_ref[0, 0]

    # Plain (TM, 1) store: only the real data is written back to HBM.
    o_ref[...] = q.astype(o_ref.dtype)


def _round_up(x, m):
    return ((x + m - 1) // m) * m


def _choose_tile(batch8, block_m, min_tiles):
    """Pick a batch tile: multiple of 8 dividing batch8 (no input padding),
    capped at block_m, optionally shrunk so there are >= min_tiles grid steps
    (pass min_tiles=2 on v7x so both TensorCores get work)."""
    tm = max(8, min(block_m, batch8))
    tm = (tm // 8) * 8
    while batch8 % tm:
        tm -= 8
    while min_tiles > 1 and batch8 // tm < min_tiles and tm > 8:
        tm -= 8
        while batch8 % tm:
            tm -= 8
    return tm


def prepare_critic_params(params, compute_dtype=jnp.bfloat16):
    """One-time preparation: zero-pad hidden dims to lane multiples and
    pre-cast the MXU operands (w1, w2) to compute_dtype.  Biases and w3 stay
    float32 (tiny, used on the VPU path)."""
    w1, b1, w2, b2, w3_row, b3 = params
    s_plus_a = w1.shape[0]
    assert w1.shape == (s_plus_a, HIDDEN1) and w2.shape == (HIDDEN1, HIDDEN2)
    w1p = jnp.pad(w1.astype(compute_dtype), ((0, 0), (0, H1_PAD - HIDDEN1)))
    b1p = jnp.pad(b1.astype(jnp.float32), ((0, 0), (0, H1_PAD - HIDDEN1)))
    w2p = jnp.pad(w2.astype(compute_dtype),
                  ((0, H1_PAD - HIDDEN1), (0, H2_PAD - HIDDEN2)))
    b2p = jnp.pad(b2.astype(jnp.float32), ((0, 0), (0, H2_PAD - HIDDEN2)))
    w3p = jnp.pad(w3_row.astype(jnp.float32), ((0, 0), (0, H2_PAD - HIDDEN2)))
    b3p = b3.reshape(1, 1).astype(jnp.float32)
    return (w1p, b1p, w2p, b2p, w3p, b3p)


def critic_forward(x, u, prepared_params, *, block_m=512, min_tiles=1):
    """x: (B, state_dim), u: (B, action_dim) -> (B, 1) float32.

    prepared_params: output of prepare_critic_params (padded, pre-cast weights).
    block_m:   max batch tile (rows per grid step). 512 amortizes per-step
               overhead well on v5e/v6e; VMEM footprint stays a few MiB.
    min_tiles: set to 2 on v7x so the 'parallel' batch axis is sharded across
               both TensorCores.
    """
    w1, b1, w2, b2, w3, b3 = prepared_params
    feat = w1.shape[0]                      # state_dim + action_dim
    cdtype = w1.dtype
    batch = x.shape[0]
    assert u.shape[0] == batch and x.shape[1] + u.shape[1] == feat

    # Fused concat happens once here (17 cols); layer 1 is a single matmul.
    xu = jnp.concatenate([x, u], axis=1).astype(cdtype)

    batch8 = _round_up(batch, 8)
    if batch8 != batch:
        xu = jnp.pad(xu, ((0, batch8 - batch), (0, 0)))
    tm = _choose_tile(batch8, block_m, min_tiles)
    num_tiles = batch8 // tm

    def resident(arr):
        # Whole-array block whose index never changes -> DMA'd once, stays in VMEM.
        return pl.BlockSpec(arr.shape, lambda i: (0, 0))

    out = pl.pallas_call(
        _critic_kernel,
        out_shape=jax.ShapeDtypeStruct((batch8, 1), jnp.float32),
        grid_spec=pltpu.PrefetchScalarGridSpec(
            num_scalar_prefetch=0,
            grid=(num_tiles,),
            in_specs=[
                pl.BlockSpec((tm, feat), lambda i: (i, 0)),         # xu batch tile
                resident(w1),                                       # (S+A, 512)
                resident(b1),                                       # (1, 512)
                resident(w2),                                       # (512, 384)
                resident(b2),                                       # (1, 384)
                resident(w3),                                       # (1, 384)
                pl.BlockSpec(memory_space=pltpu.MemorySpace.SMEM),  # b3 scalar
            ],
            out_specs=pl.BlockSpec((tm, 1), lambda i: (i, 0)),
        ),
        compiler_params=pltpu.CompilerParams(
            dimension_semantics=("parallel",),   # batch tiles are independent
        ),
    )(xu, w1, b1, w2, b2, w3, b3)

    return out[:batch]


def init_critic_params(key, state_dim, action_dim):
    """Deterministic synthetic init matching nn.Linear shapes (stored as
    x @ W layouts: W1 (S+A, 400), W2 (400, 300), W3 as a (1, 300) row)."""
    in1 = state_dim + action_dim
    k1, k2, k3, k4, k5, k6 = jax.random.split(key, 6)

    def uinit(k, shape, fan_in):
        bound = 1.0 / jnp.sqrt(fan_in)
        return jax.random.uniform(k, shape, jnp.float32, -bound, bound)

    w1 = uinit(k1, (in1, HIDDEN1), in1)
    b1 = uinit(k2, (1, HIDDEN1), in1)
    w2 = uinit(k3, (HIDDEN1, HIDDEN2), HIDDEN1)
    b2 = uinit(k4, (1, HIDDEN2), HIDDEN1)
    w3_row = uinit(k5, (1, HIDDEN2), HIDDEN2)
    b3 = uinit(k6, (1, 1), HIDDEN2)
    return (w1, b1, w2, b2, w3_row, b3)


def critic_reference(x, u, params):
    """Pure-JAX f32 reference of the PyTorch forward."""
    w1, b1, w2, b2, w3_row, b3 = params
    xu = jnp.concatenate([x, u], axis=1)
    h1 = jnp.maximum(xu @ w1 + b1, 0.0)
    h2 = jnp.maximum(h1 @ w2 + b2, 0.0)
    return h2 @ w3_row.T + b3


def critic_reference_quantized(x, u, params, compute_dtype):
    """Reference with the same weight/activation quantization the kernel uses
    (MXU operands in compute_dtype, f32 accumulation and elementwise)."""
    w1, b1, w2, b2, w3_row, b3 = params
    xu = jnp.concatenate([x, u], axis=1).astype(compute_dtype)
    h1 = jnp.dot(xu, w1.astype(compute_dtype), preferred_element_type=jnp.float32)
    h1 = jnp.maximum(h1 + b1, 0.0)
    h2 = jnp.dot(h1.astype(compute_dtype), w2.astype(compute_dtype),
                 preferred_element_type=jnp.float32)
    h2 = jnp.maximum(h2 + b2, 0.0)
    return h2 @ w3_row.T + b3


if __name__ == "__main__":
    # Quadrotor env: observation_space ~ 13-dim state, action_space ~ 4 motors.
    state_dim = 13
    action_dim = 4
    batch = 8

    key = jax.random.PRNGKey(0)
    kx, ku, kp = jax.random.split(key, 3)
    x = jax.random.normal(kx, (batch, state_dim), jnp.float32)
    u = jax.random.normal(ku, (batch, action_dim), jnp.float32)
    params = init_critic_params(kp, state_dim, action_dim)

    # f32 path: exact match against the plain f32 reference.
    prep_f32 = prepare_critic_params(params, compute_dtype=jnp.float32)
    q_f32 = jax.block_until_ready(critic_forward(x, u, prep_f32))
    q_ref_f32 = critic_reference(x, u, params)
    assert q_f32.shape == (batch, 1), q_f32.shape
    assert jnp.allclose(q_f32, q_ref_f32, atol=1e-4, rtol=1e-4), (
        f"f32 mismatch: max abs err {jnp.max(jnp.abs(q_f32 - q_ref_f32))}"
    )

    # bf16 path (default): compare against a reference with the same quantization.
    prep_bf16 = prepare_critic_params(params, compute_dtype=jnp.bfloat16)
    q_bf16 = jax.block_until_ready(critic_forward(x, u, prep_bf16))
    q_ref_bf16 = critic_reference_quantized(x, u, params, jnp.bfloat16)
    assert q_bf16.shape == (batch, 1), q_bf16.shape
    assert jnp.allclose(q_bf16, q_ref_bf16, atol=1e-3, rtol=1e-3), (
        f"bf16 mismatch: max abs err {jnp.max(jnp.abs(q_bf16 - q_ref_bf16))}"
    )

    print("KERNEL_OK")
</pallas_src>

<mosaic_0001>
module attributes {stable_mosaic.version = 11 : i64} {
  func.func @_critic_kernel(%arg0: i32, %arg1: memref<8x17xf32, #tpu.memory_space<vmem>>, %arg2: memref<17x512xf32, #tpu.memory_space<vmem>>, %arg3: memref<1x512xf32, #tpu.memory_space<vmem>>, %arg4: memref<512x384xf32, #tpu.memory_space<vmem>>, %arg5: memref<1x384xf32, #tpu.memory_space<vmem>>, %arg6: memref<1x384xf32, #tpu.memory_space<vmem>>, %arg7: memref<1x1xf32, #tpu.memory_space<smem>>, %arg8: memref<8x1xf32, #tpu.memory_space<vmem>>) attributes {dimension_semantics = [#tpu.dimension_semantics<parallel>], iteration_bounds = array<i64: 1>, scalar_prefetch = 0 : i64, scratch_operands = 0 : i64, tpu.core_type = #tpu.core_type<tc>, window_params = [{transform_indices = @transform_0, window_bounds = array<i64: 8, 17>}, {pipeline_mode = #tpu.pipeline_mode<synchronous>, transform_indices = @transform_1, window_bounds = array<i64: 17, 512>}, {pipeline_mode = #tpu.pipeline_mode<synchronous>, transform_indices = @transform_2, window_bounds = array<i64: 1, 512>}, {pipeline_mode = #tpu.pipeline_mode<synchronous>, transform_indices = @transform_3, window_bounds = array<i64: 512, 384>}, {pipeline_mode = #tpu.pipeline_mode<synchronous>, transform_indices = @transform_4, window_bounds = array<i64: 1, 384>}, {pipeline_mode = #tpu.pipeline_mode<synchronous>, transform_indices = @transform_5, window_bounds = array<i64: 1, 384>}, {transform_indices = @transform_6, window_bounds = array<i64: 1, 1>}, {transform_indices = @transform_7, window_bounds = array<i64: 8, 1>}]} {
    %c0 = arith.constant 0 : index
    %c0_0 = arith.constant 0 : index
    %0 = vector.load %arg1[%c0, %c0_0] : memref<8x17xf32, #tpu.memory_space<vmem>>, vector<8x17xf32>
    %c0_1 = arith.constant 0 : index
    %c0_2 = arith.constant 0 : index
    %1 = vector.load %arg2[%c0_1, %c0_2] : memref<17x512xf32, #tpu.memory_space<vmem>>, vector<17x512xf32>
    %cst = arith.constant dense<0.000000e+00> : vector<8x512xf32>
    %2 = tpu.matmul %0, %1, %cst {dimension_numbers = #tpu.dot_dimension_numbers<[1], [0], [0], [1], [0, 0, 1, 1], [], []>} : vector<8x17xf32>, vector<17x512xf32>, vector<8x512xf32> -> vector<8x512xf32>
    %c0_3 = arith.constant 0 : index
    %c0_4 = arith.constant 0 : index
    %3 = vector.load %arg3[%c0_3, %c0_4] : memref<1x512xf32, #tpu.memory_space<vmem>>, vector<1x512xf32>
    %4 = vector.broadcast %3 : vector<1x512xf32> to vector<8x512xf32>
    %5 = arith.addf %2, %4 : vector<8x512xf32>
    %cst_5 = arith.constant 0.000000e+00 : f32
    %6 = vector.broadcast %cst_5 : f32 to vector<8x512xf32>
    %7 = arith.maximumf %5, %6 : vector<8x512xf32>
    %c0_6 = arith.constant 0 : index
    %c0_7 = arith.constant 0 : index
    %8 = vector.load %arg4[%c0_6, %c0_7] : memref<512x384xf32, #tpu.memory_space<vmem>>, vector<512x384xf32>
    %cst_8 = arith.constant dense<0.000000e+00> : vector<8x384xf32>
    %9 = tpu.matmul %7, %8, %cst_8 {dimension_numbers = #tpu.dot_dimension_numbers<[1], [0], [0], [1], [0, 0, 1, 1], [], []>} : vector<8x512xf32>, vector<512x384xf32>, vector<8x384xf32> -> vector<8x384xf32>
    %c0_9 = arith.constant 0 : index
    %c0_10 = arith.constant 0 : index
    %10 = vector.load %arg5[%c0_9, %c0_10] : memref<1x384xf32, #tpu.memory_space<vmem>>, vector<1x384xf32>
    %11 = vector.broadcast %10 : vector<1x384xf32> to vector<8x384xf32>
    %12 = arith.addf %9, %11 : vector<8x384xf32>
    %cst_11 = arith.constant 0.000000e+00 : f32
    %13 = vector.broadcast %cst_11 : f32 to vector<8x384xf32>
    %14 = arith.maximumf %12, %13 : vector<8x384xf32>
    %c0_12 = arith.constant 0 : index
    %c0_13 = arith.constant 0 : index
    %15 = vector.load %arg6[%c0_12, %c0_13] : memref<1x384xf32, #tpu.memory_space<vmem>>, vector<1x384xf32>
    %16 = vector.broadcast %15 : vector<1x384xf32> to vector<8x384xf32>
    %17 = arith.mulf %14, %16 : vector<8x384xf32>
    %cst_14 = arith.constant dense<0.000000e+00> : vector<8xf32>
    %18 = vector.multi_reduction <add>, %17, %cst_14 [1] : vector<8x384xf32> to vector<8xf32>
    %19 = vector.shape_cast %18 : vector<8xf32> to vector<8x1xf32>
    %c0_15 = arith.constant 0 : index
    %c0_16 = arith.constant 0 : index
    %20 = memref.load %arg7[%c0_15, %c0_16] : memref<1x1xf32, #tpu.memory_space<smem>>
    %21 = vector.broadcast %20 : f32 to vector<8x1xf32>
    %22 = arith.addf %19, %21 : vector<8x1xf32>
    %c0_17 = arith.constant 0 : index
    %c0_18 = arith.constant 0 : index
    %23 = vector.load %arg8[%c0_17, %c0_18] : memref<8x1xf32, #tpu.memory_space<vmem>>, vector<8x1xf32>
    tpu.vector_store %arg8[%c0_17, %c0_18], %22 {strides = array<i32>} : memref<8x1xf32, #tpu.memory_space<vmem>>, vector<8x1xf32>,
    return
  }
  func.func @transform_0(%arg0: i32) -> (i32, i32) {
    %c0_i32 = arith.constant 0 : i32
    %c0_i32_0 = arith.constant 0 : i32
    return %arg0, %c0_i32 : i32, i32
  }
  func.func @transform_1(%arg0: i32) -> (i32, i32) {
    %c0_i32 = arith.constant 0 : i32
    %c0_i32_0 = arith.constant 0 : i32
    %c0_i32_1 = arith.constant 0 : i32
    return %c0_i32, %c0_i32_0 : i32, i32
  }
  func.func @transform_2(%arg0: i32) -> (i32, i32) {
    %c0_i32 = arith.constant 0 : i32
    %c0_i32_0 = arith.constant 0 : i32
    %c0_i32_1 = arith.constant 0 : i32
    return %c0_i32, %c0_i32_0 : i32, i32
  }
  func.func @transform_3(%arg0: i32) -> (i32, i32) {
    %c0_i32 = arith.constant 0 : i32
    %c0_i32_0 = arith.constant 0 : i32
    %c0_i32_1 = arith.constant 0 : i32
    return %c0_i32, %c0_i32_0 : i32, i32
  }
  func.func @transform_4(%arg0: i32) -> (i32, i32) {
    %c0_i32 = arith.constant 0 : i32
    %c0_i32_0 = arith.constant 0 : i32
    %c0_i32_1 = arith.constant 0 : i32
    return %c0_i32, %c0_i32_0 : i32, i32
  }
  func.func @transform_5(%arg0: i32) -> (i32, i32) {
    %c0_i32 = arith.constant 0 : i32
    %c0_i32_0 = arith.constant 0 : i32
    %c0_i32_1 = arith.constant 0 : i32
    return %c0_i32, %c0_i32_0 : i32, i32
  }
  func.func @transform_6(%arg0: i32) -> (i32, i32) {
    %c0_i32 = arith.constant 0 : i32
    %c0_i32_0 = arith.constant 0 : i32
    %c0_i32_1 = arith.constant 0 : i32
    return %c0_i32, %c0_i32_0 : i32, i32
  }
  func.func @transform_7(%arg0: i32) -> (i32, i32) {
    %c0_i32 = arith.constant 0 : i32
    %c0_i32_0 = arith.constant 0 : i32
    return %arg0, %c0_i32 : i32, i32
  }
}

</mosaic_0001>

<bundles_post_ra>
// kernel: tpu_custom_call.1
= control target key start
LH: loop header
LB: loop body
LE: loop exit
PB: predicated region body
PF: predicated region fallthrough
CT: control target
= control target key end

     0   :  { %13 = vsyncpa [#allocation4], 0  ;;  %s890_s0 = inlined_call_operand.hbm [shape: f32[8,17], index: 0, kind: input, shape index: {}]   ;;  %s891_s1 = inlined_call_operand.hbm [shape: f32[17,512], index: 1, kind: input, shape index: {}]   ;;  %s892_s2 = inlined_call_operand.hbm [shape: f32[1,512], index: 2, kind: input, shape index: {}]   ;;  %s893_s3 = inlined_call_operand.hbm [shape: f32[512,384], index: 3, kind: input, shape index: {}]   ;;  %s894_s4 = inlined_call_operand.vmem [shape: f32[1,384], index: 4, kind: input, shape index: {}]   ;;  %s895_s5 = inlined_call_operand.vmem [shape: f32[1,384], index: 5, kind: input, shape index: {}]   ;;  %s896_s6 = inlined_call_operand.<no memory space> [shape: f32[1,1], index: 6, kind: input, shape index: {}]   ;;  %s897_s7 = inlined_call_operand.vmem [shape: f32[8,1], index: 7, kind: output, shape index: {}]  }
   0x1   :  { %14 = vsyncpa [#allocation6], 0  ;;  %s31_s26 = sshll.u32 %s891_s1, 4  ;;  %s32_s26 = int_to_ptr.hbm [resolvable:$true] %s31_s26 }
   0x2   :  { %15 = vsyncpa [#allocation9], 0  ;;  %s798_s27 = smov [#allocation5]   ;;  %s21_s8 = sshll.u32 %s890_s0, 4  ;;  %s22_s8 = int_to_ptr.hbm [resolvable:$true] %s21_s8 }
   0x3   :  { %s33_s28 = sshll.u32 %s798_s27, 4  ;;  %s799_s9 = smov 512   ;;  %s34_s28 = int_to_ptr.vmem [resolvable:$true] %s33_s28 }
   0x4   :  { %s800_s10 = smov 32   ;;  %s801_s11 = smov [#allocation3]  }
   0x5   :  { %39 = dma.hbm_to_vmem [thread:$0]  %s32_s26, 1536, %s34_s28, [#allocation6], %s799_s9, %s799_s9, %s800_s10  }
   0x6   :  { %s23_s12 = sshll.u32 %s801_s11, 4  ;;  %s45_s15 = sshll.u32 %s892_s2, 4  ;;  %s24_s12 = int_to_ptr.vmem [resolvable:$true] %s23_s12  ;;  %s46_s15 = int_to_ptr.hbm [resolvable:$true] %s45_s15 }
   0x7   :  { %26 = dma.hbm_to_vmem [thread:$0]  %s22_s8, 128, %s24_s12, [#allocation4]  }
   0x8   :  { %s55_s17 = sshll.u32 %s893_s3, 4  ;;  %s802_s18 = smov [#allocation7]   ;;  %s56_s17 = int_to_ptr.hbm [resolvable:$true] %s55_s17 }
   0x9   :  { %s47_s19 = sshll.u32 %s802_s18, 4  ;;  %s803_s0 = smov [#allocation8]   ;;  %s48_s19 = int_to_ptr.vmem [resolvable:$true] %s47_s19 }
   0xa   :  { %50 = dma.hbm_to_vmem [thread:$0]  %s46_s15, 64, %s48_s19, [#allocation6]  }
   0xb   :  { %s57_s20 = sshll.u32 %s803_s0, 4  ;;  %s804_s21 = smov 384   ;;  %s58_s20 = int_to_ptr.vmem [resolvable:$true] %s57_s20 }
   0xc   :  { %s805_s22 = smov 24  }
   0xd   :  { %63 = dma.hbm_to_vmem [thread:$0]  %s56_s17, 24576, %s58_s20, [#allocation9], %s804_s21, %s804_s21, %s805_s22  }
   0xe   :  { %792 = dma.done.wait [#allocation4], 128  }
   0xf   :  { %793 = vsyncadd [#allocation4], 4294967168 }
  0x10   :  { %794 = dma.done.wait [#allocation6], 1600  }
  0x11   :  { %795 = vsyncadd [#allocation6], 4294965696 }
  0x12   :  { %796 = dma.done.wait [#allocation9], 24576  }
  0x13   :  { %797 = vsyncadd [#allocation9], 4294942720  ;;  %vm113_vm0 = vcmask 1040384   ;;  %v95_v0 = vld [vmem:[#allocation5 + $0x40] sm:$0x1]  ;;  %v92_v5 = vld [vmem:[#allocation5 + $0x28] sm:$0xff] }
  0x14   :  { %v96_v1 = vld [vmem:[#allocation5 + $0x48] sm:$0x1]  ;;  %v97_v2 = vld [vmem:[#allocation5 + $0x50] sm:$0x1]  ;;  %680 = vmatpush.msk.msra.mxu0 %vm113_vm0, %v95_v0  ;;  %v98_v3 = vld [vmem:[#allocation5 + $0x58] sm:$0x1] }
  0x15   :  { %682 = vmatpush.msk.msra.mxu1 %vm113_vm0, %v96_v1  ;;  %v91_v4 = vld [vmem:[#allocation5 + $0x20] sm:$0xff]  ;;  %684 = vmatpush.msk.msra.mxu2 %vm113_vm0, %v97_v2  ;;  %v93_v6 = vld [vmem:[#allocation5 + $0x30] sm:$0xff]  ;;  %v94_v7 = vld [vmem:[#allocation5 + $0x38] sm:$0xff]  ;;  %vm109_vm1 = vcmask 138240   ;;  %vm671_vm2 = vcmask 7168  }
  0x16   :  { %686 = vmatpush.msk.msra.mxu3 %vm113_vm0, %v98_v3  ;;  %v87_v8 = vld [vmem:[#allocation5] sm:$0xff]  ;;  %140 = vmatpush.msra.mxu0 %v91_v4  ;;  %v88_v9 = vld [vmem:[#allocation5 + $0x8] sm:$0xff]  ;;  %v89_v10 = vld [vmem:[#allocation5 + $0x10] sm:$0xff] }
  0x17   :  { %160 = vmatpush.msra.mxu1 %v92_v5  ;;  %v90_v11 = vld [vmem:[#allocation5 + $0x18] sm:$0xff]  ;;  %180 = vmatpush.msra.mxu2 %v93_v6  ;;  %v255_v13 = vld [vmem:[#allocation8 + $0x168] sm:$0xff]  ;;  %v246_v25 = vld [vmem:[#allocation8 + $0x120] sm:$0xff] }
  0x18   :  { %200 = vmatpush.msra.mxu3 %v94_v7  ;;  %v86_v12 = vld [vmem:[#allocation3] sm:$0xff]  ;;  %141 = vmatpush.msra.mxu0 %v87_v8  ;;  %v303_v14 = vld [vmem:[#allocation8 + $0x2e8] sm:$0xff]  ;;  %v294_v26 = vld [vmem:[#allocation8 + $0x2a0] sm:$0xff] }
  0x19   :  { %161 = vmatpush.msra.mxu1 %v88_v9  ;;  %181 = vmatpush.msra.mxu2 %v89_v10  ;;  %v351_v15 = vld [vmem:[#allocation8 + $0x468] sm:$0xff]  ;;  %v252_v17 = vld [vmem:[#allocation8 + $0x150] sm:$0xff]  ;;  %v249_v21 = vld [vmem:[#allocation8 + $0x138] sm:$0xff] }
  0x1a   :  { %201 = vmatpush.msra.mxu3 %v90_v11  ;;  %681 = vmatmul.msk.f32.vlgmr.msra.gmra.mxu0 %vm109_vm1, %v86_v12  ;;  %v399_v16 = vld [vmem:[#allocation8 + $0x5e8] sm:$0xff]  ;;  %v300_v18 = vld [vmem:[#allocation8 + $0x2d0] sm:$0xff]  ;;  %v297_v22 = vld [vmem:[#allocation8 + $0x2b8] sm:$0xff] }
  0x1b   :  { %683 = vmatmul.msk.f32.vlgmr.msra.gmra.mxu1 %vm109_vm1, %v86_v12  ;;  %685 = vmatmul.msk.f32.vlgmr.msra.gmra.mxu2 %vm109_vm1, %v86_v12  ;;  %v348_v19 = vld [vmem:[#allocation8 + $0x450] sm:$0xff]  ;;  %v345_v23 = vld [vmem:[#allocation8 + $0x438] sm:$0xff]  ;;  %v342_v27 = vld [vmem:[#allocation8 + $0x420] sm:$0xff] }
  0x1c   :  { %687 = vmatmul.msk.f32.vlgmr.msra.gmra.mxu3 %vm109_vm1, %v86_v12  ;;  %410 = vmatpush.msrb.mxu0 %v255_v13  ;;  %v396_v20 = vld [vmem:[#allocation8 + $0x5d0] sm:$0xff]  ;;  %v393_v24 = vld [vmem:[#allocation8 + $0x5b8] sm:$0xff]  ;;  %v390_v28 = vld [vmem:[#allocation8 + $0x5a0] sm:$0xff] }
  0x1d   :  { %430 = vmatpush.msrb.mxu1 %v303_v14  ;;  %450 = vmatpush.msrb.mxu2 %v351_v15  ;;  %v243_v29 = vld [vmem:[#allocation8 + $0x108] sm:$0xff]  ;;  %v240_v33 = vld [vmem:[#allocation8 + $0xf0] sm:$0xff]  ;;  %v237_v37 = vld [vmem:[#allocation8 + $0xd8] sm:$0xff] }
  0x1e   :  { %470 = vmatpush.msrb.mxu3 %v399_v16  ;;  %411 = vmatpush.msrb.mxu0 %v252_v17  ;;  %v291_v30 = vld [vmem:[#allocation8 + $0x288] sm:$0xff]  ;;  %v288_v34 = vld [vmem:[#allocation8 + $0x270] sm:$0xff]  ;;  %v285_v38 = vld [vmem:[#allocation8 + $0x258] sm:$0xff] }
  0x1f   :  { %431 = vmatpush.msrb.mxu1 %v300_v18  ;;  %451 = vmatpush.msrb.mxu2 %v348_v19  ;;  %v339_v31 = vld [vmem:[#allocation8 + $0x408] sm:$0xff]  ;;  %v336_v35 = vld [vmem:[#allocation8 + $0x3f0] sm:$0xff]  ;;  %v333_v39 = vld [vmem:[#allocation8 + $0x3d8] sm:$0xff] }
  0x20   :  { %471 = vmatpush.msrb.mxu3 %v396_v20  ;;  %412 = vmatpush.msrb.mxu0 %v249_v21  ;;  %v387_v32 = vld [vmem:[#allocation8 + $0x588] sm:$0xff]  ;;  %v384_v36 = vld [vmem:[#allocation8 + $0x570] sm:$0xff]  ;;  %v381_v40 = vld [vmem:[#allocation8 + $0x558] sm:$0xff] }
  0x21   :  { %432 = vmatpush.msrb.mxu1 %v297_v22  ;;  %452 = vmatpush.msrb.mxu2 %v345_v23  ;;  %v234_v41 = vld [vmem:[#allocation8 + $0xc0] sm:$0xff]  ;;  %v231_v45 = vld [vmem:[#allocation8 + $0xa8] sm:$0xff]  ;;  %v228_v49 = vld [vmem:[#allocation8 + $0x90] sm:$0xff] }
  0x22   :  { %472 = vmatpush.msrb.mxu3 %v393_v24  ;;  %413 = vmatpush.msrb.mxu0 %v246_v25  ;;  %v282_v42 = vld [vmem:[#allocation8 + $0x240] sm:$0xff]  ;;  %v279_v46 = vld [vmem:[#allocation8 + $0x228] sm:$0xff]  ;;  %v276_v50 = vld [vmem:[#allocation8 + $0x210] sm:$0xff] }
  0x23   :  { %433 = vmatpush.msrb.mxu1 %v294_v26  ;;  %453 = vmatpush.msrb.mxu2 %v342_v27  ;;  %v330_v43 = vld [vmem:[#allocation8 + $0x3c0] sm:$0xff]  ;;  %v327_v47 = vld [vmem:[#allocation8 + $0x3a8] sm:$0xff]  ;;  %v324_v51 = vld [vmem:[#allocation8 + $0x390] sm:$0xff] }
  0x24   :  { %473 = vmatpush.msrb.mxu3 %v390_v28  ;;  %414 = vmatpush.msrb.mxu0 %v243_v29  ;;  %v378_v44 = vld [vmem:[#allocation8 + $0x540] sm:$0xff]  ;;  %v375_v48 = vld [vmem:[#allocation8 + $0x528] sm:$0xff]  ;;  %v372_v52 = vld [vmem:[#allocation8 + $0x510] sm:$0xff] }
  0x25   :  { %434 = vmatpush.msrb.mxu1 %v291_v30  ;;  %454 = vmatpush.msrb.mxu2 %v339_v31  ;;  %v225_v53 = vld [vmem:[#allocation8 + $0x78] sm:$0xff]  ;;  %v222_v57 = vld [vmem:[#allocation8 + $0x60] sm:$0xff]  ;;  %v219_v61 = vld [vmem:[#allocation8 + $0x48] sm:$0xff] }
  0x26   :  { %474 = vmatpush.msrb.mxu3 %v387_v32  ;;  %415 = vmatpush.msrb.mxu0 %v240_v33  ;;  %v273_v54 = vld [vmem:[#allocation8 + $0x1f8] sm:$0xff]  ;;  %v270_v58 = vld [vmem:[#allocation8 + $0x1e0] sm:$0xff]  ;;  %v267_v62 = vld [vmem:[#allocation8 + $0x1c8] sm:$0xff] }
  0x27   :  { %435 = vmatpush.msrb.mxu1 %v288_v34  ;;  %455 = vmatpush.msrb.mxu2 %v336_v35  ;;  %v321_v55 = vld [vmem:[#allocation8 + $0x378] sm:$0xff]  ;;  %v318_v59 = vld [vmem:[#allocation8 + $0x360] sm:$0xff]  ;;  %v315_v63 = vld [vmem:[#allocation8 + $0x348] sm:$0xff] }
  0x28   :  { %475 = vmatpush.msrb.mxu3 %v384_v36  ;;  %416 = vmatpush.msrb.mxu0 %v237_v37  ;;  %v369_v56 = vld [vmem:[#allocation8 + $0x4f8] sm:$0xff]  ;;  %v366_v60 = vld [vmem:[#allocation8 + $0x4e0] sm:$0xff]  ;;  %v363_v0 = vld [vmem:[#allocation8 + $0x4c8] sm:$0xff] }
  0x29   :  { %436 = vmatpush.msrb.mxu1 %v285_v38  ;;  %456 = vmatpush.msrb.mxu2 %v333_v39  ;;  %v216_v1 = vld [vmem:[#allocation8 + $0x30] sm:$0xff]  ;;  %v213_v5 = vld [vmem:[#allocation8 + $0x18] sm:$0xff]  ;;  %v210_v9 = vld [vmem:[#allocation8] sm:$0xff] }
  0x2a   :  { %476 = vmatpush.msrb.mxu3 %v381_v40  ;;  %417 = vmatpush.msrb.mxu0 %v234_v41  ;;  %v264_v2 = vld [vmem:[#allocation8 + $0x1b0] sm:$0xff]  ;;  %v261_v6 = vld [vmem:[#allocation8 + $0x198] sm:$0xff]  ;;  %v258_v10 = vld [vmem:[#allocation8 + $0x180] sm:$0xff] }
  0x2b   :  { %437 = vmatpush.msrb.mxu1 %v282_v42  ;;  %457 = vmatpush.msrb.mxu2 %v330_v43  ;;  %v312_v3 = vld [vmem:[#allocation8 + $0x330] sm:$0xff]  ;;  %v309_v7 = vld [vmem:[#allocation8 + $0x318] sm:$0xff]  ;;  %v306_v13 = vld [vmem:[#allocation8 + $0x300] sm:$0xff] }
  0x2c   :  { %477 = vmatpush.msrb.mxu3 %v378_v44  ;;  %418 = vmatpush.msrb.mxu0 %v231_v45  ;;  %v360_v4 = vld [vmem:[#allocation8 + $0x4b0] sm:$0xff]  ;;  %v357_v8 = vld [vmem:[#allocation8 + $0x498] sm:$0xff]  ;;  %v354_v14 = vld [vmem:[#allocation8 + $0x480] sm:$0xff] }
  0x2d   :  { %438 = vmatpush.msrb.mxu1 %v279_v46  ;;  %458 = vmatpush.msrb.mxu2 %v327_v47  ;;  %v256_v11 = vld [vmem:[#allocation8 + $0x170] sm:$0xff]  ;;  %v253_v15 = vld [vmem:[#allocation8 + $0x158] sm:$0xff]  ;;  %v250_v19 = vld [vmem:[#allocation8 + $0x140] sm:$0xff] }
  0x2e   :  { %478 = vmatpush.msrb.mxu3 %v375_v48  ;;  %419 = vmatpush.msrb.mxu0 %v228_v49  ;;  %v304_v12 = vld [vmem:[#allocation8 + $0x2f0] sm:$0xff]  ;;  %v301_v16 = vld [vmem:[#allocation8 + $0x2d8] sm:$0xff]  ;;  %v298_v20 = vld [vmem:[#allocation8 + $0x2c0] sm:$0xff] }
  0x2f   :  { %439 = vmatpush.msrb.mxu1 %v276_v50  ;;  %459 = vmatpush.msrb.mxu2 %v324_v51  ;;  %v352_v17 = vld [vmem:[#allocation8 + $0x470] sm:$0xff]  ;;  %v349_v21 = vld [vmem:[#allocation8 + $0x458] sm:$0xff]  ;;  %v247_v23 = vld [vmem:[#allocation8 + $0x128] sm:$0xff] }
  0x30   :  { %479 = vmatpush.msrb.mxu3 %v372_v52  ;;  %420 = vmatpush.msrb.mxu0 %v225_v53  ;;  %v400_v18 = vld [vmem:[#allocation8 + $0x5f0] sm:$0xff]  ;;  %v397_v22 = vld [vmem:[#allocation8 + $0x5d8] sm:$0xff]  ;;  %v295_v24 = vld [vmem:[#allocation8 + $0x2a8] sm:$0xff] }
  0x31   :  { %440 = vmatpush.msrb.mxu1 %v273_v54  ;;  %460 = vmatpush.msrb.mxu2 %v321_v55  ;;  %v346_v25 = vld [vmem:[#allocation8 + $0x440] sm:$0xff]  ;;  %v244_v27 = vld [vmem:[#allocation8 + $0x110] sm:$0xff]  ;;  %v343_v29 = vld [vmem:[#allocation8 + $0x428] sm:$0xff] }
  0x32   :  { %480 = vmatpush.msrb.mxu3 %v369_v56  ;;  %421 = vmatpush.msrb.mxu0 %v222_v57  ;;  %v394_v26 = vld [vmem:[#allocation8 + $0x5c0] sm:$0xff]  ;;  %v292_v28 = vld [vmem:[#allocation8 + $0x290] sm:$0xff]  ;;  %v391_v30 = vld [vmem:[#allocation8 + $0x5a8] sm:$0xff] }
  0x33   :  { %441 = vmatpush.msrb.mxu1 %v270_v58  ;;  %461 = vmatpush.msrb.mxu2 %v318_v59  ;;  %v241_v31 = vld [vmem:[#allocation8 + $0xf8] sm:$0xff]  ;;  %v340_v33 = vld [vmem:[#allocation8 + $0x410] sm:$0xff]  ;;  %v238_v35 = vld [vmem:[#allocation8 + $0xe0] sm:$0xff] }
  0x34   :  { %481 = vmatpush.msrb.mxu3 %v366_v60  ;;  %422 = vmatpush.msrb.mxu0 %v219_v61  ;;  %v289_v32 = vld [vmem:[#allocation8 + $0x278] sm:$0xff]  ;;  %v388_v34 = vld [vmem:[#allocation8 + $0x590] sm:$0xff]  ;;  %v286_v36 = vld [vmem:[#allocation8 + $0x260] sm:$0xff] }
  0x35   :  { %442 = vmatpush.msrb.mxu1 %v267_v62  ;;  %462 = vmatpush.msrb.mxu2 %v315_v63  ;;  %v337_v37 = vld [vmem:[#allocation8 + $0x3f8] sm:$0xff]  ;;  %v235_v39 = vld [vmem:[#allocation8 + $0xc8] sm:$0xff]  ;;  %v334_v41 = vld [vmem:[#allocation8 + $0x3e0] sm:$0xff] }
  0x36   :  { %482 = vmatpush.msrb.mxu3 %v363_v0  ;;  %423 = vmatpush.msrb.mxu0 %v216_v1  ;;  %v385_v38 = vld [vmem:[#allocation8 + $0x578] sm:$0xff]  ;;  %v283_v40 = vld [vmem:[#allocation8 + $0x248] sm:$0xff]  ;;  %v382_v42 = vld [vmem:[#allocation8 + $0x560] sm:$0xff] }
  0x37   :  { %443 = vmatpush.msrb.mxu1 %v264_v2  ;;  %463 = vmatpush.msrb.mxu2 %v312_v3  ;;  %v232_v43 = vld [vmem:[#allocation8 + $0xb0] sm:$0xff]  ;;  %v331_v45 = vld [vmem:[#allocation8 + $0x3c8] sm:$0xff]  ;;  %v229_v47 = vld [vmem:[#allocation8 + $0x98] sm:$0xff] }
  0x38   :  { %483 = vmatpush.msrb.mxu3 %v360_v4  ;;  %424 = vmatpush.msrb.mxu0 %v213_v5  ;;  %v280_v44 = vld [vmem:[#allocation8 + $0x230] sm:$0xff]  ;;  %v379_v46 = vld [vmem:[#allocation8 + $0x548] sm:$0xff]  ;;  %v277_v48 = vld [vmem:[#allocation8 + $0x218] sm:$0xff] }
  0x39   :  { %444 = vmatpush.msrb.mxu1 %v261_v6  ;;  %464 = vmatpush.msrb.mxu2 %v309_v7  ;;  %v328_v49 = vld [vmem:[#allocation8 + $0x3b0] sm:$0xff]  ;;  %v226_v51 = vld [vmem:[#allocation8 + $0x80] sm:$0xff]  ;;  %v325_v53 = vld [vmem:[#allocation8 + $0x398] sm:$0xff] }
  0x3a   :  { %484 = vmatpush.msrb.mxu3 %v357_v8  ;;  %425 = vmatpush.msrb.mxu0 %v210_v9  ;;  %v376_v50 = vld [vmem:[#allocation8 + $0x530] sm:$0xff]  ;;  %v274_v52 = vld [vmem:[#allocation8 + $0x200] sm:$0xff]  ;;  %v373_v54 = vld [vmem:[#allocation8 + $0x518] sm:$0xff] }
  0x3b   :  { %445 = vmatpush.msrb.mxu1 %v258_v10  ;;  %465 = vmatpush.msrb.mxu2 %v306_v13  ;;  %v223_v55 = vld [vmem:[#allocation8 + $0x68] sm:$0xff]  ;;  %v220_v57 = vld [vmem:[#allocation8 + $0x50] sm:$0xff]  ;;  %v217_v59 = vld [vmem:[#allocation8 + $0x38] sm:$0xff] }
  0x3c   :  { %490 = vmatpush.msra.mxu0 %v256_v11  ;;  %485 = vmatpush.msrb.mxu3 %v354_v14  ;;  %v271_v56 = vld [vmem:[#allocation8 + $0x1e8] sm:$0xff]  ;;  %v268_v58 = vld [vmem:[#allocation8 + $0x1d0] sm:$0xff]  ;;  %v265_v60 = vld [vmem:[#allocation8 + $0x1b8] sm:$0xff] }
  0x3d   :  { %510 = vmatpush.msra.mxu1 %v304_v12  ;;  %530 = vmatpush.msra.mxu2 %v352_v17  ;;  %v322_v61 = vld [vmem:[#allocation8 + $0x380] sm:$0xff]  ;;  %v319_v1 = vld [vmem:[#allocation8 + $0x368] sm:$0xff]  ;;  %v316_v5 = vld [vmem:[#allocation8 + $0x350] sm:$0xff] }
  0x3e   :  { %491 = vmatpush.msra.mxu0 %v253_v15  ;;  %550 = vmatpush.msra.mxu3 %v400_v18  ;;  %v370_v62 = vld [vmem:[#allocation8 + $0x500] sm:$0xff]  ;;  %v367_v2 = vld [vmem:[#allocation8 + $0x4e8] sm:$0xff]  ;;  %v364_v6 = vld [vmem:[#allocation8 + $0x4d0] sm:$0xff] }
  0x3f   :  { %511 = vmatpush.msra.mxu1 %v301_v16  ;;  %531 = vmatpush.msra.mxu2 %v349_v21  ;;  %v214_v63 = vld [vmem:[#allocation8 + $0x20] sm:$0xff]  ;;  %v211_v3 = vld [vmem:[#allocation8 + $0x8] sm:$0xff]  ;;  %v313_v7 = vld [vmem:[#allocation8 + $0x338] sm:$0xff] }
  0x40   :  { %492 = vmatpush.msra.mxu0 %v250_v19  ;;  %551 = vmatpush.msra.mxu3 %v397_v22  ;;  %v262_v0 = vld [vmem:[#allocation8 + $0x1a0] sm:$0xff]  ;;  %v259_v4 = vld [vmem:[#allocation8 + $0x188] sm:$0xff]  ;;  %v361_v8 = vld [vmem:[#allocation8 + $0x4b8] sm:$0xff] }
  0x41   :  { %512 = vmatpush.msra.mxu1 %v298_v20  ;;  %532 = vmatpush.msra.mxu2 %v346_v25  ;;  %v310_v9 = vld [vmem:[#allocation8 + $0x320] sm:$0xff]  ;;  %v307_v11 = vld [vmem:[#allocation8 + $0x308] sm:$0xff]  ;;  %v99_v13 = vld [vmem:[#allocation7] sm:$0xf] }
  0x42   :  { %493 = vmatpush.msra.mxu0 %v247_v23  ;;  %552 = vmatpush.msra.mxu3 %v394_v26  ;;  %v358_v10 = vld [vmem:[#allocation8 + $0x4a0] sm:$0xff]  ;;  %v355_v12 = vld [vmem:[#allocation8 + $0x488] sm:$0xff]  ;;  %v101_v14 = vperm.slane %v99_v13, 0  ;;  %v102_v15 = vperm.slane %v99_v13, 1  ;;  %v257_v22 = vld [vmem:[#allocation8 + $0x178] sm:$0xff]  ;;  %v104_v25 = vperm.slane %v99_v13, 3 }
  0x43   :  { %513 = vmatpush.msra.mxu1 %v295_v24  ;;  %533 = vmatpush.msra.mxu2 %v343_v29  ;;  %v305_v23 = vld [vmem:[#allocation8 + $0x2f8] sm:$0xff]  ;;  %v103_v24 = vperm.slane %v99_v13, 2  ;;  %v254_v26 = vld [vmem:[#allocation8 + $0x160] sm:$0xff] }
  0x44   :  { %494 = vmatpush.msra.mxu0 %v244_v27  ;;  %553 = vmatpush.msra.mxu3 %v391_v30  ;;  %v302_v27 = vld [vmem:[#allocation8 + $0x2e0] sm:$0xff]  ;;  %v251_v30 = vld [vmem:[#allocation8 + $0x148] sm:$0xff] }
  0x45   :  { %514 = vmatpush.msra.mxu1 %v292_v28  ;;  %534 = vmatpush.msra.mxu2 %v340_v33  ;;  %v266_v13 = vld [vmem:[#allocation8 + $0x1c0] sm:$0xff] }
  0x46   :  { %495 = vmatpush.msra.mxu0 %v241_v31  ;;  %554 = vmatpush.msra.mxu3 %v388_v34  ;;  %v299_v31 = vld [vmem:[#allocation8 + $0x2c8] sm:$0xff] }
  0x47   :  { %515 = vmatpush.msra.mxu1 %v289_v32  ;;  %535 = vmatpush.msra.mxu2 %v337_v37  ;;  %v296_v37 = vld [vmem:[#allocation8 + $0x2b0] sm:$0xff] }
  0x48   :  { %496 = vmatpush.msra.mxu0 %v238_v35  ;;  %555 = vmatpush.msra.mxu3 %v385_v38  ;;  %v353_v38 = vld [vmem:[#allocation8 + $0x478] sm:$0xff] }
  0x49   :  { %516 = vmatpush.msra.mxu1 %v286_v36  ;;  %536 = vmatpush.msra.mxu2 %v334_v41  ;;  %v248_v36 = vld [vmem:[#allocation8 + $0x130] sm:$0xff]  ;;  %v245_v41 = vld [vmem:[#allocation8 + $0x118] sm:$0xff] }
  0x4a   :  { %497 = vmatpush.msra.mxu0 %v235_v39  ;;  %556 = vmatpush.msra.mxu3 %v382_v42  ;;  %v401_v39 = vld [vmem:[#allocation8 + $0x5f8] sm:$0xff]  ;;  %v350_v42 = vld [vmem:[#allocation8 + $0x460] sm:$0xff] }
  0x4b   :  { %517 = vmatpush.msra.mxu1 %v283_v40  ;;  %537 = vmatpush.msra.mxu2 %v331_v45  ;;  %v293_v40 = vld [vmem:[#allocation8 + $0x298] sm:$0xff]  ;;  %v290_v45 = vld [vmem:[#allocation8 + $0x280] sm:$0xff] }
  0x4c   :  { %498 = vmatpush.msra.mxu0 %v232_v43  ;;  %557 = vmatpush.msra.mxu3 %v379_v46  ;;  %v398_v43 = vld [vmem:[#allocation8 + $0x5e0] sm:$0xff]  ;;  %v347_v46 = vld [vmem:[#allocation8 + $0x448] sm:$0xff] }
  0x4d   :  { %518 = vmatpush.msra.mxu1 %v280_v44  ;;  %538 = vmatpush.msra.mxu2 %v328_v49  ;;  %v242_v44 = vld [vmem:[#allocation8 + $0x100] sm:$0xff]  ;;  %v287_v49 = vld [vmem:[#allocation8 + $0x268] sm:$0xff] }
  0x4e   :  { %499 = vmatpush.msra.mxu0 %v229_v47  ;;  %558 = vmatpush.msra.mxu3 %v376_v50  ;;  %v395_v47 = vld [vmem:[#allocation8 + $0x5c8] sm:$0xff]  ;;  %v344_v50 = vld [vmem:[#allocation8 + $0x430] sm:$0xff] }
  0x4f   :  { %519 = vmatpush.msra.mxu1 %v277_v48  ;;  %539 = vmatpush.msra.mxu2 %v325_v53  ;;  %v239_v48 = vld [vmem:[#allocation8 + $0xe8] sm:$0xff]  ;;  %v284_v53 = vld [vmem:[#allocation8 + $0x250] sm:$0xff] }
  0x50   :  { %500 = vmatpush.msra.mxu0 %v226_v51  ;;  %559 = vmatpush.msra.mxu3 %v373_v54  ;;  %v392_v51 = vld [vmem:[#allocation8 + $0x5b0] sm:$0xff]  ;;  %v341_v54 = vld [vmem:[#allocation8 + $0x418] sm:$0xff] }
  0x51   :  { %520 = vmatpush.msra.mxu1 %v274_v52  ;;  %540 = vmatpush.msra.mxu2 %v322_v61  ;;  %v236_v52 = vld [vmem:[#allocation8 + $0xd0] sm:$0xff]  ;;  %v278_v61 = vld [vmem:[#allocation8 + $0x220] sm:$0xff] }
  0x52   :  { %501 = vmatpush.msra.mxu0 %v223_v55  ;;  %560 = vmatpush.msra.mxu3 %v370_v62  ;;  %v389_v55 = vld [vmem:[#allocation8 + $0x598] sm:$0xff]  ;;  %v335_v62 = vld [vmem:[#allocation8 + $0x3e8] sm:$0xff] }
  0x53   :  { %521 = vmatpush.msra.mxu1 %v271_v56  ;;  %541 = vmatpush.msra.mxu2 %v319_v1  ;;  %v233_v56 = vld [vmem:[#allocation8 + $0xb8] sm:$0xff]  ;;  %v275_v1 = vld [vmem:[#allocation8 + $0x208] sm:$0xff] }
  0x54   :  { %502 = vmatpush.msra.mxu0 %v220_v57  ;;  %561 = vmatpush.msra.mxu3 %v367_v2  ;;  %v281_v57 = vld [vmem:[#allocation8 + $0x238] sm:$0xff]  ;;  %v332_v2 = vld [vmem:[#allocation8 + $0x3d0] sm:$0xff] }
  0x55   :  { %522 = vmatpush.msra.mxu1 %v268_v58  ;;  %542 = vmatpush.msra.mxu2 %v316_v5  ;;  %v338_v58 = vld [vmem:[#allocation8 + $0x400] sm:$0xff]  ;;  %v272_v5 = vld [vmem:[#allocation8 + $0x1f0] sm:$0xff] }
  0x56   :  { %503 = vmatpush.msra.mxu0 %v217_v59  ;;  %562 = vmatpush.msra.mxu3 %v364_v6  ;;  %v386_v59 = vld [vmem:[#allocation8 + $0x580] sm:$0xff]  ;;  %v329_v6 = vld [vmem:[#allocation8 + $0x3b8] sm:$0xff] }
  0x57   :  { %523 = vmatpush.msra.mxu1 %v265_v60  ;;  %543 = vmatpush.msra.mxu2 %v313_v7  ;;  %v230_v60 = vld [vmem:[#allocation8 + $0xa0] sm:$0xff]  ;;  %v377_v7 = vld [vmem:[#allocation8 + $0x538] sm:$0xff] }
  0x58   :  { %504 = vmatpush.msra.mxu0 %v214_v63  ;;  %563 = vmatpush.msra.mxu3 %v361_v8  ;;  %v383_v63 = vld [vmem:[#allocation8 + $0x568] sm:$0xff]  ;;  %v221_v8 = vld [vmem:[#allocation8 + $0x58] sm:$0xff] }
  0x59   :  { %524 = vmatpush.msra.mxu1 %v262_v0  ;;  %544 = vmatpush.msra.mxu2 %v310_v9  ;;  %v227_v0 = vld [vmem:[#allocation8 + $0x88] sm:$0xff]  ;;  %v269_v9 = vld [vmem:[#allocation8 + $0x1d8] sm:$0xff] }
  0x5a   :  { %505 = vmatpush.msra.mxu0 %v211_v3  ;;  %564 = vmatpush.msra.mxu3 %v358_v10  ;;  %v380_v3 = vld [vmem:[#allocation8 + $0x550] sm:$0xff]  ;;  %v326_v10 = vld [vmem:[#allocation8 + $0x3a0] sm:$0xff] }
  0x5b   :  { %525 = vmatpush.msra.mxu1 %v259_v4  ;;  %545 = vmatpush.msra.mxu2 %v307_v11  ;;  %v224_v4 = vld [vmem:[#allocation8 + $0x70] sm:$0xff]  ;;  %v374_v11 = vld [vmem:[#allocation8 + $0x520] sm:$0xff] }
  0x5c   :  { %565 = vmatpush.msra.mxu3 %v355_v12  ;;  %v218_v12 = vld [vmem:[#allocation8 + $0x40] sm:$0xff] }
  0x97   :  { %v143_v16 = vpop.f32.mrf.mxu0 }
  0x98   :  { %v163_v17 = vpop.f32.mrf.mxu1  ;;  %v144_v18 = vadd.f32 %v143_v16, %v101_v14  ;;  %v323_v14 = vld [vmem:[#allocation8 + $0x388] sm:$0xff] }
  0x99   :  { %v164_v19 = vadd.f32 %v163_v17, %v102_v15  ;;  %v371_v15 = vld [vmem:[#allocation8 + $0x508] sm:$0xff] }
  0x9a   :  { %v858_v20 = vmax.f32 %v144_v18, 0.0  ;;  %v215_v16 = vld [vmem:[#allocation8 + $0x28] sm:$0xff]  ;;  %v320_v18 = vld [vmem:[#allocation8 + $0x370] sm:$0xff] }
  0x9b   :  { %v860_v21 = vmax.f32 %v164_v19, 0.0  ;;  %v263_v17 = vld [vmem:[#allocation8 + $0x1a8] sm:$0xff]  ;;  %v368_v19 = vld [vmem:[#allocation8 + $0x4f0] sm:$0xff] }
  0x9c   :  { %426 = vmatmul.f32.vlgmr.msrb.gmra.mxu0 %v858_v20 }
  0x9d   :  { %446 = vmatmul.f32.vlgmr.msrb.gmra.mxu1 %v860_v21  ;;  %570 = vmatpush.msrb.mxu0 %v257_v22  ;;  %v212_v22 = vld [vmem:[#allocation8 + $0x10] sm:$0xff] }
  0x9e   :  { %590 = vmatpush.msrb.mxu1 %v305_v23  ;;  %v183_v28 = vpop.f32.mrf.mxu2  ;;  %v260_v23 = vld [vmem:[#allocation8 + $0x190] sm:$0xff] }
  0x9f   :  { %v203_v29 = vpop.f32.mrf.mxu3  ;;  %v184_v32 = vadd.f32 %v183_v28, %v103_v24  ;;  %571 = vmatpush.msrb.mxu0 %v254_v26  ;;  %v317_v24 = vld [vmem:[#allocation8 + $0x358] sm:$0xff]  ;;  %v314_v26 = vld [vmem:[#allocation8 + $0x340] sm:$0xff]  ;;  %v311_v28 = vld [vmem:[#allocation8 + $0x328] sm:$0xff] }
  0xa0   :  { %v204_v33 = vadd.f32 %v203_v29, %v104_v25  ;;  %591 = vmatpush.msrb.mxu1 %v302_v27  ;;  %v365_v25 = vld [vmem:[#allocation8 + $0x4d8] sm:$0xff]  ;;  %v362_v27 = vld [vmem:[#allocation8 + $0x4c0] sm:$0xff]  ;;  %v359_v29 = vld [vmem:[#allocation8 + $0x4a8] sm:$0xff] }
  0xa1   :  { %v864_v34 = vmax.f32 %v184_v32, 0.0  ;;  %572 = vmatpush.msrb.mxu0 %v251_v30  ;;  %v308_v30 = vld [vmem:[#allocation8 + $0x310] sm:$0xff] }
  0xa2   :  { %v866_v35 = vmax.f32 %v204_v33, 0.0  ;;  %592 = vmatpush.msrb.mxu1 %v299_v31  ;;  %v356_v31 = vld [vmem:[#allocation8 + $0x490] sm:$0xff] }
  0xa3   :  { %466 = vmatmul.f32.vlgmr.msrb.gmra.mxu2 %v864_v34  ;;  %573 = vmatpush.msrb.mxu0 %v248_v36 }
  0xa4   :  { %486 = vmatmul.f32.vlgmr.msrb.gmra.mxu3 %v866_v35  ;;  %593 = vmatpush.msrb.mxu1 %v296_v37 }
  0xa5   :  { %610 = vmatpush.msrb.mxu2 %v353_v38  ;;  %630 = vmatpush.msrb.mxu3 %v401_v39 }
  0xa6   :  { %506 = vmatmul.f32.vlgmr.msra.gmra.mxu0 %v858_v20  ;;  %594 = vmatpush.msrb.mxu1 %v293_v40 }
  0xa7   :  { %574 = vmatpush.msrb.mxu0 %v245_v41  ;;  %611 = vmatpush.msrb.mxu2 %v350_v42 }
  0xa8   :  { %631 = vmatpush.msrb.mxu3 %v398_v43  ;;  %526 = vmatmul.f32.vlgmr.msra.gmra.mxu1 %v860_v21 }
  0xa9   :  { %575 = vmatpush.msrb.mxu0 %v242_v44  ;;  %595 = vmatpush.msrb.mxu1 %v290_v45 }
  0xaa   :  { %612 = vmatpush.msrb.mxu2 %v347_v46  ;;  %632 = vmatpush.msrb.mxu3 %v395_v47 }
  0xab   :  { %576 = vmatpush.msrb.mxu0 %v239_v48  ;;  %596 = vmatpush.msrb.mxu1 %v287_v49 }
  0xac   :  { %613 = vmatpush.msrb.mxu2 %v344_v50  ;;  %633 = vmatpush.msrb.mxu3 %v392_v51 }
  0xad   :  { %546 = vmatmul.f32.vlgmr.msra.gmra.mxu2 %v864_v34  ;;  %566 = vmatmul.f32.vlgmr.msra.gmra.mxu3 %v866_v35 }
  0xae   :  { %577 = vmatpush.msrb.mxu0 %v236_v52  ;;  %597 = vmatpush.msrb.mxu1 %v284_v53  ;;  %v653_v52 = vld [vmem:[%s895_s5] sm:$0x7] }
  0xaf   :  { %614 = vmatpush.msrb.mxu2 %v341_v54  ;;  %634 = vmatpush.msrb.mxu3 %v389_v55  ;;  %v656_v55 = vperm.slane %v653_v52, 1 }
  0xb0   :  { %578 = vmatpush.msrb.mxu0 %v233_v56  ;;  %598 = vmatpush.msrb.mxu1 %v281_v57 }
  0xb1   :  { %615 = vmatpush.msrb.mxu2 %v338_v58  ;;  %635 = vmatpush.msrb.mxu3 %v386_v59  ;;  %v655_v59 = vperm.slane %v653_v52, 0 }
  0xb2   :  { %579 = vmatpush.msrb.mxu0 %v230_v60  ;;  %599 = vmatpush.msrb.mxu1 %v278_v61 }
  0xb3   :  { %616 = vmatpush.msrb.mxu2 %v335_v62  ;;  %636 = vmatpush.msrb.mxu3 %v383_v63 }
  0xb4   :  { %580 = vmatpush.msrb.mxu0 %v227_v0  ;;  %600 = vmatpush.msrb.mxu1 %v275_v1  ;;  %v657_v0 = vperm.slane %v653_v52, 2 }
  0xb5   :  { %617 = vmatpush.msrb.mxu2 %v332_v2  ;;  %637 = vmatpush.msrb.mxu3 %v380_v3 }
  0xb6   :  { %581 = vmatpush.msrb.mxu0 %v224_v4  ;;  %601 = vmatpush.msrb.mxu1 %v272_v5 }
  0xb7   :  { %618 = vmatpush.msrb.mxu2 %v329_v6  ;;  %638 = vmatpush.msrb.mxu3 %v377_v7  ;;  %v669_v6 = vstv %s896_s6 }
  0xb8   :  { %582 = vmatpush.msrb.mxu0 %v221_v8  ;;  %602 = vmatpush.msrb.mxu1 %v269_v9 }
  0xb9   :  { %619 = vmatpush.msrb.mxu2 %v326_v10  ;;  %639 = vmatpush.msrb.mxu3 %v374_v11 }
  0xba   :  { %583 = vmatpush.msrb.mxu0 %v218_v12  ;;  %603 = vmatpush.msrb.mxu1 %v266_v13 }
  0xbb   :  { %620 = vmatpush.msrb.mxu2 %v323_v14  ;;  %640 = vmatpush.msrb.mxu3 %v371_v15 }
  0xbc   :  { %584 = vmatpush.msrb.mxu0 %v215_v16  ;;  %604 = vmatpush.msrb.mxu1 %v263_v17 }
  0xbd   :  { %621 = vmatpush.msrb.mxu2 %v320_v18  ;;  %641 = vmatpush.msrb.mxu3 %v368_v19 }
  0xbe   :  { %585 = vmatpush.msrb.mxu0 %v212_v22  ;;  %605 = vmatpush.msrb.mxu1 %v260_v23 }
  0xbf   :  { %622 = vmatpush.msrb.mxu2 %v317_v24  ;;  %642 = vmatpush.msrb.mxu3 %v365_v25 }
  0xc0   :  { %586 = vmatmul.f32.vlgmr.msrb.gmra.mxu0 %v858_v20  ;;  %606 = vmatmul.f32.vlgmr.msrb.gmra.mxu1 %v860_v21  ;;  %v402_v20 = vld [vmem:[%s894_s4] sm:$0x7] }
  0xc1   :  { %623 = vmatpush.msrb.mxu2 %v314_v26  ;;  %643 = vmatpush.msrb.mxu3 %v362_v27  ;;  %v404_v36 = vperm.slane %v402_v20, 0  ;;  %v405_v37 = vperm.slane %v402_v20, 1  ;;  %v406_v46 = vperm.slane %v402_v20, 2 }
  0xc3   :  { %624 = vmatpush.msrb.mxu2 %v311_v28  ;;  %644 = vmatpush.msrb.mxu3 %v359_v29 }
  0xc5   :  { %625 = vmatpush.msrb.mxu2 %v308_v30  ;;  %645 = vmatpush.msrb.mxu3 %v356_v31 }
  0xc6   :  { %626 = vmatmul.f32.vlgmr.msrb.gmra.mxu2 %v864_v34  ;;  %646 = vmatmul.f32.vlgmr.msrb.gmra.mxu3 %v866_v35 }
 0x119   :  { %v427_v32 = vpop.f32.mrf.mxu0 }
 0x11a   :  { %v447_v33 = vpop.f32.mrf.mxu1  ;;  %v428_v40 = vadd.f32 %v427_v32, %v404_v36 }
 0x11c   :  { %v448_v44 = vadd.f32 %v447_v33, %v428_v40 }
 0x123   :  { %v507_v38 = vpop.f32.mrf.mxu0 }
 0x124   :  { %v508_v41 = vadd.f32 %v507_v38, %v405_v37 }
 0x125   :  { %v527_v42 = vpop.f32.mrf.mxu1 }
 0x126   :  { %v467_v21 = vpop.f32.mrf.mxu2  ;;  %v528_v45 = vadd.f32 %v527_v42, %v508_v41 }
 0x127   :  { %v487_v39 = vpop.f32.mrf.mxu3  ;;  %v468_v47 = vadd.f32 %v467_v21, %v448_v44 }
 0x129   :  { %v488_v51 = vadd.f32 %v487_v39, %v468_v47 }
 0x12b   :  { %v650_v58 = vmax.f32 %v488_v51, 0.0 }
 0x12d   :  { %v661_v1 = vmul.f32 %v655_v59, %v650_v58 }
 0x130   :  { %v547_v43 = vpop.f32.mrf.mxu2  ;;  %v567_v48 = vpop.f32.mrf.mxu3 }
 0x131   :  { %v548_v34 = vadd.f32 %v547_v43, %v528_v45 }
 0x133   :  { %v568_v49 = vadd.f32 %v567_v48, %v548_v34 }
 0x135   :  { %v651_v54 = vmax.f32 %v568_v49, 0.0 }
 0x137   :  { %v662_v62 = vmul.f32 %v656_v55, %v651_v54 }
 0x139   :  { %v664_v4 = vadd.f32 %v662_v62, %v661_v1 }
 0x13d   :  { %v587_v35 = vpop.f32.mrf.mxu0  ;;  %v607_v53 = vpop.f32.mrf.mxu1 }
 0x13e   :  { %v588_v50 = vadd.f32 %v587_v35, %v406_v46 }
 0x140   :  { %v608_v56 = vadd.f32 %v607_v53, %v588_v50 }
 0x149   :  { %v627_v57 = vpop.f32.mrf.mxu2  ;;  %v647_v61 = vpop.f32.mrf.mxu3 }
 0x14a   :  { %v628_v60 = vadd.f32 %v627_v57, %v608_v56 }
 0x14c   :  { %v648_v63 = vadd.f32 %v647_v61, %v628_v60 }
 0x14e   :  { %v652_v2 = vmax.f32 %v648_v63, 0.0 }
 0x150   :  { %v663_v3 = vmul.f32 %v657_v0, %v652_v2 }
 0x152   :  { %v665_v5 = vadd.f32 %v664_v4, %v663_v3 }
 0x154   :  { %666 = vadd.xlane.f32.xlu0 %v665_v5 }
 0x1c7   :  { %v667_v7 = vpop.xlane.xlu0 %666 }
 0x1c8   :  { %v670_v8 = vadd.f32 %v669_v6, %v667_v7 }
 0x1ca   :  { %672 = vst.msk [vmem:[%s897_s7] sm:$0xff] %vm671_vm2, %v670_v8 }
 0x1cb   :  { %677 = vsyncpa [#allocation4], 1 }
 0x1cc   :  { %678 = vsyncpa [#allocation6], 1 }
 0x1cd   :  { %679 = vsyncpa [#allocation9], 1 }

</bundles_post_ra>
